<compile_context>
chip_gen: v5e
topology: v5e:2x2
jax: 0.10.0
libtpu: 0.0.40
codegen_flags: <defaults>
</compile_context>

<pallas_src>
import jax
import jax.numpy as jnp
from jax.experimental import pallas as pl
from jax.experimental.pallas import tpu as pltpu

LANE = 128
SUBLANE = 8


def _round_up(x, m):
    return (x + m - 1) // m * m


def _pad2d(a, rows, cols):
    return jnp.pad(a, ((0, rows - a.shape[0]), (0, cols - a.shape[1])))


def _pick_tb(batch, sub, cap):
    """Batch tile: sublane-aligned, capped, and >=2 grid steps when possible (v7x TCs)."""
    cap = max(sub, (cap // sub) * sub)
    if batch <= sub:
        return batch                      # single exact block (block == full array dim)
    tb = min(_round_up(pl.cdiv(batch, 2), sub), cap)
    if tb > batch:
        return batch
    return tb


def mlp_kernel(x_ref,
               w1_ref, b1_ref,
               w2_ref, b2_ref,
               w3_ref, b3_ref,
               w4_ref, b4_ref,
               w5_ref, b5_ref,
               o_ref):
    # x_ref: (TB, D_pad) tile in the streaming dtype; weights/biases: whole lane-padded
    # arrays resident in VMEM (constant index_map).  Zero-padded lanes stay exactly zero
    # through Linear+ReLU, so numerics match the reference.
    def layer(h, w_ref, b_ref, relu):
        h = jnp.dot(h.astype(w_ref.dtype), w_ref[...],
                    preferred_element_type=jnp.float32)
        h = h + b_ref[...]                      # f32 bias, f32 accumulate
        return jnp.maximum(h, 0.0) if relu else h

    h = x_ref[...]
    h = layer(h, w1_ref, b1_ref, True)
    h = layer(h, w2_ref, b2_ref, True)
    h = layer(h, w3_ref, b3_ref, True)
    h = layer(h, w4_ref, b4_ref, True)
    h = layer(h, w5_ref, b5_ref, False)
    o_ref[...] = h.astype(o_ref.dtype)


def neural_network_forward(x, params, tb_max=4096, trim_output=True):
    """x: (B, H, W) in f32 or bf16.  params: list of 5 (W, b) pairs, W is (in, out)."""
    B = x.shape[0]
    x_flat = x.reshape(B, -1)                   # nn.Flatten (contiguous reshape: free)
    D = x_flat.shape[1]
    out_dim = params[-1][0].shape[1]
    x_dtype = x_flat.dtype
    itemsize = jnp.dtype(x_dtype).itemsize
    sub = max(SUBLANE, 32 // itemsize)          # sublane granularity for this dtype

    # --- lane-dense padding of feature widths (zeros preserve exact numerics) ---
    D_pad = _round_up(D, LANE)
    if D_pad != D:
        # TODO(synk): only non-128-multiple input sizes pay this extra copy; could be
        # folded into the kernel with an in-kernel mask if it ever matters.
        x_flat = jnp.pad(x_flat, ((0, 0), (0, D_pad - D)))

    padded = []
    prev_dim = D_pad
    for (w, b) in params:
        fan_out_pad = _round_up(w.shape[1], LANE)
        w_p = _pad2d(w, prev_dim, fan_out_pad)                      # keep caller dtype
        b_p = jnp.pad(b.astype(jnp.float32),
                      (0, fan_out_pad - b.shape[0])).reshape(1, fan_out_pad)
        padded.append((w_p, b_p))
        prev_dim = fan_out_pad
    out_pad = prev_dim

    # --- batch tiling: no wrapper-side batch pad; Pallas handles the partial last block ---
    TB = _pick_tb(B, sub, tb_max)
    grid = (pl.cdiv(B, TB),)

    flat_args = [x_flat]
    in_specs = [pl.BlockSpec((TB, D_pad), lambda i: (i, 0))]
    for (w_p, b_p) in padded:
        flat_args.append(w_p)
        in_specs.append(pl.BlockSpec(w_p.shape, lambda i: (0, 0)))  # VMEM-resident
        flat_args.append(b_p)
        in_specs.append(pl.BlockSpec(b_p.shape, lambda i: (0, 0)))

    def nbytes(shape, dtype):
        n = 1
        for s in shape:
            n *= int(s)
        return n * jnp.dtype(dtype).itemsize

    block_bytes = nbytes((TB, D_pad), x_dtype) + nbytes((TB, out_pad), x_dtype)
    block_bytes += sum(nbytes(w_p.shape, w_p.dtype) + nbytes(b_p.shape, b_p.dtype)
                       for (w_p, b_p) in padded)
    # Double-buffered pipeline + margin.  (Constant-index weight blocks would only need
    # single buffering, but their footprint is <1 MiB so we keep the default buffering.)
    vmem_limit = int(min(max(2 * block_bytes + (4 << 20), 32 << 20), 48 << 20))

    real_flops = 2 * B * sum(int(w.shape[0]) * int(w.shape[1]) for (w, _) in params)
    bytes_accessed = (nbytes((B, D_pad), x_dtype) + nbytes((B, out_pad), x_dtype)
                      + sum(nbytes(w_p.shape, w_p.dtype) + nbytes(b_p.shape, b_p.dtype)
                            for (w_p, b_p) in padded))

    out = pl.pallas_call(
        mlp_kernel,
        out_shape=jax.ShapeDtypeStruct((B, out_pad), x_dtype),
        grid=grid,
        in_specs=in_specs,
        out_specs=pl.BlockSpec((TB, out_pad), lambda i: (i, 0)),
        compiler_params=pltpu.CompilerParams(
            dimension_semantics=("parallel",),
            vmem_limit_bytes=vmem_limit),
        cost_estimate=pl.CostEstimate(
            flops=real_flops, transcendentals=0, bytes_accessed=int(bytes_accessed)),
    )(*flat_args)

    if trim_output:
        # (B, 10) per the module; pass trim_output=False if the consumer can take the
        # lane-padded (B, 128) slab and skip this extra lane slice.
        return out[:, :out_dim]
    return out


def init_params(key, input_size=(16, 16)):
    """Deterministic init mimicking PyTorch nn.Linear (uniform +/- 1/sqrt(fan_in))."""
    dims = [input_size[0] * input_size[1], 16, 16, 16, 16, 10]
    params = []
    for i in range(len(dims) - 1):
        fan_in, fan_out = dims[i], dims[i + 1]
        key, kw, kb = jax.random.split(key, 3)
        bound = 1.0 / jnp.sqrt(jnp.float32(fan_in))
        w = jax.random.uniform(kw, (fan_in, fan_out), jnp.float32, -bound, bound)
        b = jax.random.uniform(kb, (fan_out,), jnp.float32, -bound, bound)
        params.append((w, b))
    return params


def reference_forward(x, params):
    h = x.reshape(x.shape[0], -1).astype(jnp.float32)
    for i, (w, b) in enumerate(params):
        h = h @ w.astype(jnp.float32) + b.astype(jnp.float32)
        if i < len(params) - 1:
            h = jnp.maximum(h, 0.0)
    return h


if __name__ == "__main__":
    key = jax.random.PRNGKey(0)
    k_params, k_x = jax.random.split(key)

    input_size = (16, 16)
    batch = 2
    params = init_params(k_params, input_size)
    x = jax.random.normal(k_x, (batch, input_size[0], input_size[1]), jnp.float32)

    ref = reference_forward(x, params)

    # 1) exact f32 path
    out_f32 = jax.block_until_ready(neural_network_forward(x, params))
    assert out_f32.shape == (batch, 10)
    assert jnp.allclose(out_f32, ref, atol=1e-5, rtol=1e-5)

    # 2) bf16-streamed path (bf16 activations/weights, f32 accumulation, f32 biases):
    #    halves the dominant HBM traffic on the memory-bound roofline.
    x_bf16 = x.astype(jnp.bfloat16)
    params_bf16 = [(w.astype(jnp.bfloat16), b) for (w, b) in params]
    out_bf16 = jax.block_until_ready(neural_network_forward(x_bf16, params_bf16))
    assert out_bf16.shape == (batch, 10)
    assert jnp.allclose(out_bf16.astype(jnp.float32), ref, atol=5e-2, rtol=5e-2)

    print("KERNEL_OK")
</pallas_src>

<mosaic_0001>
module attributes {stable_mosaic.version = 11 : i64} {
  func.func @mlp_kernel(%arg0: i32, %arg1: memref<2x256xf32, #tpu.memory_space<vmem>>, %arg2: memref<256x128xf32, #tpu.memory_space<vmem>>, %arg3: memref<1x128xf32, #tpu.memory_space<vmem>>, %arg4: memref<128x128xf32, #tpu.memory_space<vmem>>, %arg5: memref<1x128xf32, #tpu.memory_space<vmem>>, %arg6: memref<128x128xf32, #tpu.memory_space<vmem>>, %arg7: memref<1x128xf32, #tpu.memory_space<vmem>>, %arg8: memref<128x128xf32, #tpu.memory_space<vmem>>, %arg9: memref<1x128xf32, #tpu.memory_space<vmem>>, %arg10: memref<128x128xf32, #tpu.memory_space<vmem>>, %arg11: memref<1x128xf32, #tpu.memory_space<vmem>>, %arg12: memref<2x128xf32, #tpu.memory_space<vmem>>) attributes {dimension_semantics = [#tpu.dimension_semantics<parallel>], iteration_bounds = array<i64: 1>, scalar_prefetch = 0 : i64, scratch_operands = 0 : i64, tpu.core_type = #tpu.core_type<tc>, window_params = [{transform_indices = @transform_0, window_bounds = array<i64: 2, 256>}, {pipeline_mode = #tpu.pipeline_mode<synchronous>, transform_indices = @transform_1, window_bounds = array<i64: 256, 128>}, {pipeline_mode = #tpu.pipeline_mode<synchronous>, transform_indices = @transform_2, window_bounds = array<i64: 1, 128>}, {pipeline_mode = #tpu.pipeline_mode<synchronous>, transform_indices = @transform_3, window_bounds = array<i64: 128, 128>}, {pipeline_mode = #tpu.pipeline_mode<synchronous>, transform_indices = @transform_4, window_bounds = array<i64: 1, 128>}, {pipeline_mode = #tpu.pipeline_mode<synchronous>, transform_indices = @transform_5, window_bounds = array<i64: 128, 128>}, {pipeline_mode = #tpu.pipeline_mode<synchronous>, transform_indices = @transform_6, window_bounds = array<i64: 1, 128>}, {pipeline_mode = #tpu.pipeline_mode<synchronous>, transform_indices = @transform_7, window_bounds = array<i64: 128, 128>}, {pipeline_mode = #tpu.pipeline_mode<synchronous>, transform_indices = @transform_8, window_bounds = array<i64: 1, 128>}, {pipeline_mode = #tpu.pipeline_mode<synchronous>, transform_indices = @transform_9, window_bounds = array<i64: 128, 128>}, {pipeline_mode = #tpu.pipeline_mode<synchronous>, transform_indices = @transform_10, window_bounds = array<i64: 1, 128>}, {transform_indices = @transform_11, window_bounds = array<i64: 2, 128>}]} {
    %c0 = arith.constant 0 : index
    %c0_0 = arith.constant 0 : index
    %0 = vector.load %arg1[%c0, %c0_0] : memref<2x256xf32, #tpu.memory_space<vmem>>, vector<2x256xf32>
    %c0_1 = arith.constant 0 : index
    %c0_2 = arith.constant 0 : index
    %1 = vector.load %arg2[%c0_1, %c0_2] : memref<256x128xf32, #tpu.memory_space<vmem>>, vector<256x128xf32>
    %cst = arith.constant dense<0.000000e+00> : vector<2x128xf32>
    %2 = tpu.matmul %0, %1, %cst {dimension_numbers = #tpu.dot_dimension_numbers<[1], [0], [0], [1], [0, 0, 1, 1], [], []>} : vector<2x256xf32>, vector<256x128xf32>, vector<2x128xf32> -> vector<2x128xf32>
    %c0_3 = arith.constant 0 : index
    %c0_4 = arith.constant 0 : index
    %3 = vector.load %arg3[%c0_3, %c0_4] : memref<1x128xf32, #tpu.memory_space<vmem>>, vector<1x128xf32>
    %4 = vector.broadcast %3 : vector<1x128xf32> to vector<2x128xf32>
    %5 = arith.addf %2, %4 : vector<2x128xf32>
    %cst_5 = arith.constant 0.000000e+00 : f32
    %6 = vector.broadcast %cst_5 : f32 to vector<2x128xf32>
    %7 = arith.maximumf %5, %6 : vector<2x128xf32>
    %c0_6 = arith.constant 0 : index
    %c0_7 = arith.constant 0 : index
    %8 = vector.load %arg4[%c0_6, %c0_7] : memref<128x128xf32, #tpu.memory_space<vmem>>, vector<128x128xf32>
    %cst_8 = arith.constant dense<0.000000e+00> : vector<2x128xf32>
    %9 = tpu.matmul %7, %8, %cst_8 {dimension_numbers = #tpu.dot_dimension_numbers<[1], [0], [0], [1], [0, 0, 1, 1], [], []>} : vector<2x128xf32>, vector<128x128xf32>, vector<2x128xf32> -> vector<2x128xf32>
    %c0_9 = arith.constant 0 : index
    %c0_10 = arith.constant 0 : index
    %10 = vector.load %arg5[%c0_9, %c0_10] : memref<1x128xf32, #tpu.memory_space<vmem>>, vector<1x128xf32>
    %11 = vector.broadcast %10 : vector<1x128xf32> to vector<2x128xf32>
    %12 = arith.addf %9, %11 : vector<2x128xf32>
    %cst_11 = arith.constant 0.000000e+00 : f32
    %13 = vector.broadcast %cst_11 : f32 to vector<2x128xf32>
    %14 = arith.maximumf %12, %13 : vector<2x128xf32>
    %c0_12 = arith.constant 0 : index
    %c0_13 = arith.constant 0 : index
    %15 = vector.load %arg6[%c0_12, %c0_13] : memref<128x128xf32, #tpu.memory_space<vmem>>, vector<128x128xf32>
    %cst_14 = arith.constant dense<0.000000e+00> : vector<2x128xf32>
    %16 = tpu.matmul %14, %15, %cst_14 {dimension_numbers = #tpu.dot_dimension_numbers<[1], [0], [0], [1], [0, 0, 1, 1], [], []>} : vector<2x128xf32>, vector<128x128xf32>, vector<2x128xf32> -> vector<2x128xf32>
    %c0_15 = arith.constant 0 : index
    %c0_16 = arith.constant 0 : index
    %17 = vector.load %arg7[%c0_15, %c0_16] : memref<1x128xf32, #tpu.memory_space<vmem>>, vector<1x128xf32>
    %18 = vector.broadcast %17 : vector<1x128xf32> to vector<2x128xf32>
    %19 = arith.addf %16, %18 : vector<2x128xf32>
    %cst_17 = arith.constant 0.000000e+00 : f32
    %20 = vector.broadcast %cst_17 : f32 to vector<2x128xf32>
    %21 = arith.maximumf %19, %20 : vector<2x128xf32>
    %c0_18 = arith.constant 0 : index
    %c0_19 = arith.constant 0 : index
    %22 = vector.load %arg8[%c0_18, %c0_19] : memref<128x128xf32, #tpu.memory_space<vmem>>, vector<128x128xf32>
    %cst_20 = arith.constant dense<0.000000e+00> : vector<2x128xf32>
    %23 = tpu.matmul %21, %22, %cst_20 {dimension_numbers = #tpu.dot_dimension_numbers<[1], [0], [0], [1], [0, 0, 1, 1], [], []>} : vector<2x128xf32>, vector<128x128xf32>, vector<2x128xf32> -> vector<2x128xf32>
    %c0_21 = arith.constant 0 : index
    %c0_22 = arith.constant 0 : index
    %24 = vector.load %arg9[%c0_21, %c0_22] : memref<1x128xf32, #tpu.memory_space<vmem>>, vector<1x128xf32>
    %25 = vector.broadcast %24 : vector<1x128xf32> to vector<2x128xf32>
    %26 = arith.addf %23, %25 : vector<2x128xf32>
    %cst_23 = arith.constant 0.000000e+00 : f32
    %27 = vector.broadcast %cst_23 : f32 to vector<2x128xf32>
    %28 = arith.maximumf %26, %27 : vector<2x128xf32>
    %c0_24 = arith.constant 0 : index
    %c0_25 = arith.constant 0 : index
    %29 = vector.load %arg10[%c0_24, %c0_25] : memref<128x128xf32, #tpu.memory_space<vmem>>, vector<128x128xf32>
    %cst_26 = arith.constant dense<0.000000e+00> : vector<2x128xf32>
    %30 = tpu.matmul %28, %29, %cst_26 {dimension_numbers = #tpu.dot_dimension_numbers<[1], [0], [0], [1], [0, 0, 1, 1], [], []>} : vector<2x128xf32>, vector<128x128xf32>, vector<2x128xf32> -> vector<2x128xf32>
    %c0_27 = arith.constant 0 : index
    %c0_28 = arith.constant 0 : index
    %31 = vector.load %arg11[%c0_27, %c0_28] : memref<1x128xf32, #tpu.memory_space<vmem>>, vector<1x128xf32>
    %32 = vector.broadcast %31 : vector<1x128xf32> to vector<2x128xf32>
    %33 = arith.addf %30, %32 : vector<2x128xf32>
    %c0_29 = arith.constant 0 : index
    %c0_30 = arith.constant 0 : index
    %34 = vector.load %arg12[%c0_29, %c0_30] : memref<2x128xf32, #tpu.memory_space<vmem>>, vector<2x128xf32>
    tpu.vector_store %arg12[%c0_29, %c0_30], %33 {strides = array<i32>} : memref<2x128xf32, #tpu.memory_space<vmem>>, vector<2x128xf32>,
    return
  }
  func.func @transform_0(%arg0: i32) -> (i32, i32) {
    %c0_i32 = arith.constant 0 : i32
    %c0_i32_0 = arith.constant 0 : i32
    return %arg0, %c0_i32 : i32, i32
  }
  func.func @transform_1(%arg0: i32) -> (i32, i32) {
    %c0_i32 = arith.constant 0 : i32
    %c0_i32_0 = arith.constant 0 : i32
    %c0_i32_1 = arith.constant 0 : i32
    return %c0_i32, %c0_i32_0 : i32, i32
  }
  func.func @transform_2(%arg0: i32) -> (i32, i32) {
    %c0_i32 = arith.constant 0 : i32
    %c0_i32_0 = arith.constant 0 : i32
    %c0_i32_1 = arith.constant 0 : i32
    return %c0_i32, %c0_i32_0 : i32, i32
  }
  func.func @transform_3(%arg0: i32) -> (i32, i32) {
    %c0_i32 = arith.constant 0 : i32
    %c0_i32_0 = arith.constant 0 : i32
    %c0_i32_1 = arith.constant 0 : i32
    return %c0_i32, %c0_i32_0 : i32, i32
  }
  func.func @transform_4(%arg0: i32) -> (i32, i32) {
    %c0_i32 = arith.constant 0 : i32
    %c0_i32_0 = arith.constant 0 : i32
    %c0_i32_1 = arith.constant 0 : i32
    return %c0_i32, %c0_i32_0 : i32, i32
  }
  func.func @transform_5(%arg0: i32) -> (i32, i32) {
    %c0_i32 = arith.constant 0 : i32
    %c0_i32_0 = arith.constant 0 : i32
    %c0_i32_1 = arith.constant 0 : i32
    return %c0_i32, %c0_i32_0 : i32, i32
  }
  func.func @transform_6(%arg0: i32) -> (i32, i32) {
    %c0_i32 = arith.constant 0 : i32
    %c0_i32_0 = arith.constant 0 : i32
    %c0_i32_1 = arith.constant 0 : i32
    return %c0_i32, %c0_i32_0 : i32, i32
  }
  func.func @transform_7(%arg0: i32) -> (i32, i32) {
    %c0_i32 = arith.constant 0 : i32
    %c0_i32_0 = arith.constant 0 : i32
    %c0_i32_1 = arith.constant 0 : i32
    return %c0_i32, %c0_i32_0 : i32, i32
  }
  func.func @transform_8(%arg0: i32) -> (i32, i32) {
    %c0_i32 = arith.constant 0 : i32
    %c0_i32_0 = arith.constant 0 : i32
    %c0_i32_1 = arith.constant 0 : i32
    return %c0_i32, %c0_i32_0 : i32, i32
  }
  func.func @transform_9(%arg0: i32) -> (i32, i32) {
    %c0_i32 = arith.constant 0 : i32
    %c0_i32_0 = arith.constant 0 : i32
    %c0_i32_1 = arith.constant 0 : i32
    return %c0_i32, %c0_i32_0 : i32, i32
  }
  func.func @transform_10(%arg0: i32) -> (i32, i32) {
    %c0_i32 = arith.constant 0 : i32
    %c0_i32_0 = arith.constant 0 : i32
    %c0_i32_1 = arith.constant 0 : i32
    return %c0_i32, %c0_i32_0 : i32, i32
  }
  func.func @transform_11(%arg0: i32) -> (i32, i32) {
    %c0_i32 = arith.constant 0 : i32
    %c0_i32_0 = arith.constant 0 : i32
    return %arg0, %c0_i32 : i32, i32
  }
}

</mosaic_0001>

<bundles_post_ra>
// kernel: tpu_custom_call.1
= control target key start
LH: loop header
LB: loop body
LE: loop exit
PB: predicated region body
PF: predicated region fallthrough
CT: control target
= control target key end

     0   :  { %16 = vsyncpa [#allocation3], 0  ;;  %s711_s0 = inlined_call_operand.hbm [shape: f32[2,256], index: 0, kind: input, shape index: {}]   ;;  %s712_s1 = inlined_call_operand.hbm [shape: f32[256,128], index: 1, kind: input, shape index: {}]   ;;  %s713_s2 = inlined_call_operand.vmem [shape: f32[1,128], index: 2, kind: input, shape index: {}]   ;;  %s714_s3 = inlined_call_operand.hbm [shape: f32[128,128], index: 3, kind: input, shape index: {}]   ;;  %s715_s4 = inlined_call_operand.vmem [shape: f32[1,128], index: 4, kind: input, shape index: {}]   ;;  %s716_s5 = inlined_call_operand.hbm [shape: f32[128,128], index: 5, kind: input, shape index: {}]   ;;  %s717_s6 = inlined_call_operand.vmem [shape: f32[1,128], index: 6, kind: input, shape index: {}]   ;;  %s718_s7 = inlined_call_operand.hbm [shape: f32[128,128], index: 7, kind: input, shape index: {}]   ;;  %s719_s8 = inlined_call_operand.vmem [shape: f32[1,128], index: 8, kind: input, shape index: {}]   ;;  %s720_s9 = inlined_call_operand.hbm [shape: f32[128,128], index: 9, kind: input, shape index: {}]   ;;  %s721_s10 = inlined_call_operand.vmem [shape: f32[1,128], index: 10, kind: input, shape index: {}]   ;;  %s722_s11 = inlined_call_operand.hbm [shape: f32[2,128], index: 11, kind: output, shape index: {}]  }
   0x1   :  { %17 = vsyncpa [#allocation6], 0 }
   0x2   :  { %18 = vsyncpa [#allocation9], 0 }
   0x3   :  { %19 = vsyncpa [#allocation12], 0  ;;  %s36_s19 = sshll.u32 %s712_s1, 4  ;;  %s37_s19 = int_to_ptr.hbm [resolvable:$true] %s36_s19 }
   0x4   :  { %20 = vsyncpa [#allocation4], 0  ;;  %s591_s20 = smov [#allocation5]   ;;  %s66_s24 = sshll.u32 %s716_s5, 4  ;;  %s67_s24 = int_to_ptr.hbm [resolvable:$true] %s66_s24 }
   0x5   :  { %s38_s21 = sshll.u32 %s591_s20, 4  ;;  %s592_s25 = smov 128   ;;  %s39_s21 = int_to_ptr.vmem [resolvable:$true] %s38_s21 }
   0x6   :  { %s593_s26 = smov 8   ;;  %s594_s27 = smov [#allocation8]  }
   0x7   :  { %44 = dma.hbm_to_vmem [thread:$0]  %s37_s19, 4096, %s39_s21, [#allocation6], %s592_s25, %s592_s25, %s593_s26  }
   0x8   :  { %s68_s28 = sshll.u32 %s594_s27, 4  ;;  %s26_s30 = sshll.u32 %s711_s0, 4  ;;  %s69_s28 = int_to_ptr.vmem [resolvable:$true] %s68_s28  ;;  %s27_s30 = int_to_ptr.hbm [resolvable:$true] %s26_s30 }
   0x9   :  { %74 = dma.hbm_to_vmem [thread:$0]  %s67_s24, 2048, %s69_s28, [#allocation9], %s592_s25, %s592_s25, %s593_s26  }
   0xa   :  { %s51_s13 = sshll.u32 %s714_s3, 4  ;;  %s595_s14 = smov [#allocation2]   ;;  %s52_s13 = int_to_ptr.hbm [resolvable:$true] %s51_s13 }
   0xb   :  { %s28_s15 = sshll.u32 %s595_s14, 4  ;;  %s596_s16 = smov [#allocation7]   ;;  %s29_s15 = int_to_ptr.vmem [resolvable:$true] %s28_s15 }
   0xc   :  { %31 = dma.hbm_to_vmem [thread:$0]  %s27_s30, 64, %s29_s15, [#allocation3]  }
   0xd   :  { %s53_s17 = sshll.u32 %s596_s16, 4  ;;  %s81_s0 = sshll.u32 %s718_s7, 4  ;;  %s54_s17 = int_to_ptr.vmem [resolvable:$true] %s53_s17  ;;  %s82_s0 = int_to_ptr.hbm [resolvable:$true] %s81_s0 }
   0xe   :  { %59 = dma.hbm_to_vmem [thread:$0]  %s52_s13, 2048, %s54_s17, [#allocation6], %s592_s25, %s592_s25, %s593_s26  }
   0xf   :  { %s96_s3 = sshll.u32 %s720_s9, 4  ;;  %s597_s22 = smov [#allocation10]   ;;  %s97_s3 = int_to_ptr.hbm [resolvable:$true] %s96_s3 }
  0x10   :  { %s83_s23 = sshll.u32 %s597_s22, 4  ;;  %s598_s24 = smov [#allocation11]   ;;  %s84_s23 = int_to_ptr.vmem [resolvable:$true] %s83_s23 }
  0x11   :  { %89 = dma.hbm_to_vmem [thread:$0]  %s82_s0, 2048, %s84_s23, [#allocation9], %s592_s25, %s592_s25, %s593_s26  }
  0x12   :  { %s98_s7 = sshll.u32 %s598_s24, 4  ;;  %s99_s7 = int_to_ptr.vmem [resolvable:$true] %s98_s7 }
  0x13   :  { %104 = dma.hbm_to_vmem [thread:$0]  %s97_s3, 2048, %s99_s7, [#allocation12], %s592_s25, %s592_s25, %s593_s26  }
  0x14   :  { %581 = dma.done.wait [#allocation3], 64  }
  0x15   :  { %582 = vsyncadd [#allocation3], 4294967232 }
  0x16   :  { %583 = dma.done.wait [#allocation6], 6144  }
  0x17   :  { %584 = vsyncadd [#allocation6], 4294961152 }
  0x18   :  { %585 = dma.done.wait [#allocation9], 4096  }
  0x19   :  { %586 = vsyncadd [#allocation9], 4294963200 }
  0x1a   :  { %587 = dma.done.wait [#allocation12], 2048  }
  0x1b   :  { %588 = vsyncadd [#allocation12], 4294965248  ;;  %v147_v0 = vld [vmem:[#allocation5 + $0x78] sm:$0xff]  ;;  %v146_v1 = vld [vmem:[#allocation5 + $0x70] sm:$0xff]  ;;  %s599_s30 = smov [#allocation13]   ;;  %s386_s14 = sshll.u32 %s722_s11, 4  ;;  %s387_s14 = int_to_ptr.hbm [resolvable:$true] %s386_s14 }
  0x1c   :  { %v163_v2 = vld [vmem:[#allocation5 + $0xf8] sm:$0xff]  ;;  %174 = vmatpush.msra.mxu0 %v147_v0  ;;  %v162_v3 = vld [vmem:[#allocation5 + $0xf0] sm:$0xff]  ;;  %v145_v4 = vld [vmem:[#allocation5 + $0x68] sm:$0xff]  ;;  %s384_s5 = sshll.u32 %s599_s30, 4  ;;  %s385_s5 = int_to_ptr.vmem [resolvable:$true] %s384_s5 }
  0x1d   :  { %194 = vmatpush.msra.mxu1 %v163_v2  ;;  %v161_v5 = vld [vmem:[#allocation5 + $0xe8] sm:$0xff]  ;;  %v144_v6 = vld [vmem:[#allocation5 + $0x60] sm:$0xff]  ;;  %v143_v8 = vld [vmem:[#allocation5 + $0x58] sm:$0xff] }
  0x1e   :  { %175 = vmatpush.msra.mxu0 %v146_v1  ;;  %v160_v7 = vld [vmem:[#allocation5 + $0xe0] sm:$0xff]  ;;  %v159_v9 = vld [vmem:[#allocation5 + $0xd8] sm:$0xff]  ;;  %v142_v10 = vld [vmem:[#allocation5 + $0x50] sm:$0xff] }
  0x1f   :  { %195 = vmatpush.msra.mxu1 %v162_v3  ;;  %v158_v11 = vld [vmem:[#allocation5 + $0xd0] sm:$0xff]  ;;  %v141_v12 = vld [vmem:[#allocation5 + $0x48] sm:$0xff]  ;;  %v131_v14 = vld [vmem:[#allocation2] sm:$0xf] }
  0x20   :  { %176 = vmatpush.msra.mxu0 %v145_v4  ;;  %v157_v13 = vld [vmem:[#allocation5 + $0xc8] sm:$0xff]  ;;  %169 = vst [vmem:[#allocation1] ss:$4 sm:$0xff] %v131_v14  ;;  %v230_v15 = vld [vmem:[#allocation7 + $0x78] sm:$0xff]  ;;  %v229_v16 = vld [vmem:[#allocation7 + $0x70] sm:$0xff] }
  0x21   :  { %196 = vmatpush.msra.mxu1 %v161_v5  ;;  %v140_v17 = vld [vmem:[#allocation5 + $0x40] sm:$0xff]  ;;  %235 = vmatpush.msra.mxu2 %v230_v15  ;;  %v139_v19 = vld [vmem:[#allocation5 + $0x38] sm:$0xff]  ;;  %v228_v20 = vld [vmem:[#allocation7 + $0x68] sm:$0xff] }
  0x22   :  { %177 = vmatpush.msra.mxu0 %v144_v6  ;;  %v156_v18 = vld [vmem:[#allocation5 + $0xc0] sm:$0xff]  ;;  %v138_v21 = vld [vmem:[#allocation5 + $0x30] sm:$0xff]  ;;  %v155_v22 = vld [vmem:[#allocation5 + $0xb8] sm:$0xff] }
  0x23   :  { %197 = vmatpush.msra.mxu1 %v160_v7  ;;  %v154_v23 = vld [vmem:[#allocation5 + $0xb0] sm:$0xff]  ;;  %236 = vmatpush.msra.mxu2 %v229_v16  ;;  %v227_v24 = vld [vmem:[#allocation7 + $0x60] sm:$0xff]  ;;  %v226_v25 = vld [vmem:[#allocation7 + $0x58] sm:$0xff] }
  0x24   :  { %178 = vmatpush.msra.mxu0 %v143_v8  ;;  %v137_v26 = vld [vmem:[#allocation5 + $0x28] sm:$0xff]  ;;  %v225_v28 = vld [vmem:[#allocation7 + $0x50] sm:$0xff]  ;;  %v136_v29 = vld [vmem:[#allocation5 + $0x20] sm:$0xff] }
  0x25   :  { %198 = vmatpush.msra.mxu1 %v159_v9  ;;  %237 = vmatpush.msra.mxu2 %v228_v20  ;;  %v153_v27 = vld [vmem:[#allocation5 + $0xa8] sm:$0xff]  ;;  %v152_v30 = vld [vmem:[#allocation5 + $0xa0] sm:$0xff]  ;;  %v135_v32 = vld [vmem:[#allocation5 + $0x18] sm:$0xff] }
  0x26   :  { %179 = vmatpush.msra.mxu0 %v142_v10  ;;  %v224_v31 = vld [vmem:[#allocation7 + $0x48] sm:$0xff]  ;;  %v151_v33 = vld [vmem:[#allocation5 + $0x98] sm:$0xff]  ;;  %v223_v34 = vld [vmem:[#allocation7 + $0x40] sm:$0xff] }
  0x27   :  { %199 = vmatpush.msra.mxu1 %v158_v11  ;;  %238 = vmatpush.msra.mxu2 %v227_v24  ;;  %v134_v35 = vld [vmem:[#allocation5 + $0x10] sm:$0xff]  ;;  %v222_v37 = vld [vmem:[#allocation7 + $0x38] sm:$0xff]  ;;  %v133_v38 = vld [vmem:[#allocation5 + $0x8] sm:$0xff] }
  0x28   :  { %180 = vmatpush.msra.mxu0 %v141_v12  ;;  %v150_v36 = vld [vmem:[#allocation5 + $0x90] sm:$0xff]  ;;  %v149_v39 = vld [vmem:[#allocation5 + $0x88] sm:$0xff]  ;;  %v132_v41 = vld [vmem:[#allocation5] sm:$0xff] }
  0x29   :  { %200 = vmatpush.msra.mxu1 %v157_v13  ;;  %239 = vmatpush.msra.mxu2 %v226_v25  ;;  %v221_v40 = vld [vmem:[#allocation7 + $0x30] sm:$0xff]  ;;  %v148_v42 = vld [vmem:[#allocation5 + $0x80] sm:$0xff]  ;;  %v220_v45 = vld [vmem:[#allocation7 + $0x28] sm:$0xff] }
  0x2a   :  { %181 = vmatpush.msra.mxu0 %v140_v17  ;;  %v170_v43 = vld.sshfl [vmem:[#allocation1] sm:$0xff pattern:$0x73625140]  ;;  %v171_v44 = vld.sshfl [vmem:[#allocation1 + $0x8] sm:$0xff pattern:$0x73625140] }
  0x2b   :  { %201 = vmatpush.msra.mxu1 %v156_v18  ;;  %240 = vmatpush.msra.mxu2 %v225_v28  ;;  %v219_v46 = vld [vmem:[#allocation7 + $0x20] sm:$0xff]  ;;  %v218_v47 = vld [vmem:[#allocation7 + $0x18] sm:$0xff]  ;;  %v217_v48 = vld [vmem:[#allocation7 + $0x10] sm:$0xff] }
  0x2c   :  { %182 = vmatpush.msra.mxu0 %v139_v19  ;;  %v216_v49 = vld [vmem:[#allocation7 + $0x8] sm:$0xff]  ;;  %v215_v50 = vld [vmem:[#allocation7] sm:$0xff]  ;;  %v271_v51 = vld [vmem:[#allocation8 + $0x78] sm:$0xff] }
  0x2d   :  { %202 = vmatpush.msra.mxu1 %v155_v22  ;;  %241 = vmatpush.msra.mxu2 %v224_v31  ;;  %v270_v52 = vld [vmem:[#allocation8 + $0x70] sm:$0xff]  ;;  %v269_v53 = vld [vmem:[#allocation8 + $0x68] sm:$0xff]  ;;  %v268_v54 = vld [vmem:[#allocation8 + $0x60] sm:$0xff] }
  0x2e   :  { %183 = vmatpush.msra.mxu0 %v138_v21  ;;  %276 = vmatpush.msra.mxu3 %v271_v51  ;;  %v267_v55 = vld [vmem:[#allocation8 + $0x58] sm:$0xff]  ;;  %v266_v56 = vld [vmem:[#allocation8 + $0x50] sm:$0xff]  ;;  %v265_v57 = vld [vmem:[#allocation8 + $0x48] sm:$0xff] }
  0x2f   :  { %203 = vmatpush.msra.mxu1 %v154_v23  ;;  %242 = vmatpush.msra.mxu2 %v223_v34  ;;  %v264_v58 = vld [vmem:[#allocation8 + $0x40] sm:$0xff]  ;;  %v263_v59 = vld [vmem:[#allocation8 + $0x38] sm:$0xff]  ;;  %v262_v60 = vld [vmem:[#allocation8 + $0x30] sm:$0xff] }
  0x30   :  { %184 = vmatpush.msra.mxu0 %v137_v26  ;;  %277 = vmatpush.msra.mxu3 %v270_v52  ;;  %v261_v61 = vld [vmem:[#allocation8 + $0x28] sm:$0xff]  ;;  %v260_v62 = vld [vmem:[#allocation8 + $0x20] sm:$0xff]  ;;  %v408_v63 = vld [vmem:[%s713_s2] ss:$0 sm:$0xff] }
  0x31   :  { %204 = vmatpush.msra.mxu1 %v153_v27  ;;  %243 = vmatpush.msra.mxu2 %v222_v37  ;;  %v259_v0 = vld [vmem:[#allocation8 + $0x18] sm:$0xff]  ;;  %v258_v6 = vld [vmem:[#allocation8 + $0x10] sm:$0xff]  ;;  %v257_v7 = vld [vmem:[#allocation8 + $0x8] sm:$0xff] }
  0x32   :  { %185 = vmatpush.msra.mxu0 %v136_v29  ;;  %278 = vmatpush.msra.mxu3 %v269_v53  ;;  %v256_v8 = vld [vmem:[#allocation8] sm:$0xff]  ;;  %v312_v9 = vld [vmem:[#allocation10 + $0x78] sm:$0xff]  ;;  %v311_v10 = vld [vmem:[#allocation10 + $0x70] sm:$0xff] }
  0x33   :  { %205 = vmatpush.msra.mxu1 %v152_v30  ;;  %244 = vmatpush.msra.mxu2 %v221_v40  ;;  %v310_v11 = vld [vmem:[#allocation10 + $0x68] sm:$0xff]  ;;  %v309_v12 = vld [vmem:[#allocation10 + $0x60] sm:$0xff]  ;;  %v308_v13 = vld [vmem:[#allocation10 + $0x58] sm:$0xff] }
  0x34   :  { %186 = vmatpush.msra.mxu0 %v135_v32  ;;  %279 = vmatpush.msra.mxu3 %v268_v54  ;;  %v307_v14 = vld [vmem:[#allocation10 + $0x50] sm:$0xff]  ;;  %v306_v15 = vld [vmem:[#allocation10 + $0x48] sm:$0xff]  ;;  %v305_v16 = vld [vmem:[#allocation10 + $0x40] sm:$0xff] }
  0x35   :  { %206 = vmatpush.msra.mxu1 %v151_v33  ;;  %245 = vmatpush.msra.mxu2 %v220_v45  ;;  %v304_v17 = vld [vmem:[#allocation10 + $0x38] sm:$0xff]  ;;  %v303_v18 = vld [vmem:[#allocation10 + $0x30] sm:$0xff]  ;;  %v302_v19 = vld [vmem:[#allocation10 + $0x28] sm:$0xff] }
  0x36   :  { %187 = vmatpush.msra.mxu0 %v134_v35  ;;  %280 = vmatpush.msra.mxu3 %v267_v55  ;;  %v301_v20 = vld [vmem:[#allocation10 + $0x20] sm:$0xff]  ;;  %v300_v21 = vld [vmem:[#allocation10 + $0x18] sm:$0xff]  ;;  %v409_v22 = vld [vmem:[%s715_s4] ss:$0 sm:$0xff] }
  0x37   :  { %207 = vmatpush.msra.mxu1 %v150_v36  ;;  %246 = vmatpush.msra.mxu2 %v219_v46  ;;  %v299_v26 = vld [vmem:[#allocation10 + $0x10] sm:$0xff]  ;;  %v298_v27 = vld [vmem:[#allocation10 + $0x8] sm:$0xff]  ;;  %v297_v28 = vld [vmem:[#allocation10] sm:$0xff] }
  0x38   :  { %188 = vmatpush.msra.mxu0 %v133_v38  ;;  %281 = vmatpush.msra.mxu3 %v266_v56  ;;  %v353_v29 = vld [vmem:[#allocation11 + $0x78] sm:$0xff]  ;;  %v352_v30 = vld [vmem:[#allocation11 + $0x70] sm:$0xff]  ;;  %v351_v31 = vld [vmem:[#allocation11 + $0x68] sm:$0xff] }
  0x39   :  { %208 = vmatpush.msra.mxu1 %v149_v39  ;;  %247 = vmatpush.msra.mxu2 %v218_v47  ;;  %v350_v32 = vld [vmem:[#allocation11 + $0x60] sm:$0xff]  ;;  %v349_v33 = vld [vmem:[#allocation11 + $0x58] sm:$0xff]  ;;  %v348_v34 = vld [vmem:[#allocation11 + $0x50] sm:$0xff] }
  0x3a   :  { %189 = vmatpush.msra.mxu0 %v132_v41  ;;  %282 = vmatpush.msra.mxu3 %v265_v57  ;;  %v347_v35 = vld [vmem:[#allocation11 + $0x48] sm:$0xff]  ;;  %v346_v36 = vld [vmem:[#allocation11 + $0x40] sm:$0xff]  ;;  %v345_v37 = vld [vmem:[#allocation11 + $0x38] sm:$0xff] }
  0x3b   :  { %209 = vmatpush.msra.mxu1 %v148_v42  ;;  %190 = vmatmul.f32.vlgmr.msra.gmra.mxu0 %v170_v43  ;;  %v344_v38 = vld [vmem:[#allocation11 + $0x30] sm:$0xff]  ;;  %v343_v39 = vld [vmem:[#allocation11 + $0x28] sm:$0xff]  ;;  %v342_v40 = vld [vmem:[#allocation11 + $0x20] sm:$0xff] }
  0x3c   :  { %210 = vmatmul.f32.vlgmr.msra.gmra.mxu1 %v171_v44  ;;  %248 = vmatpush.msra.mxu2 %v217_v48  ;;  %v341_v41 = vld [vmem:[#allocation11 + $0x18] sm:$0xff]  ;;  %v410_v42 = vld [vmem:[%s717_s6] ss:$0 sm:$0xff]  ;;  %v339_v47 = vld [vmem:[#allocation11 + $0x8] sm:$0xff] }
  0x3d   :  { %283 = vmatpush.msra.mxu3 %v264_v58  ;;  %317 = vmatpush.msrb.mxu0 %v312_v9  ;;  %v340_v46 = vld [vmem:[#allocation11 + $0x10] sm:$0xff]  ;;  %v338_v48 = vld [vmem:[#allocation11] sm:$0xff] }
  0x3e   :  { %249 = vmatpush.msra.mxu2 %v216_v49  ;;  %358 = vmatpush.msrb.mxu1 %v353_v29  ;;  %v411_v49 = vld [vmem:[%s719_s8] ss:$0 sm:$0xff] }
  0x3f   :  { %284 = vmatpush.msra.mxu3 %v263_v59  ;;  %318 = vmatpush.msrb.mxu0 %v311_v10  ;;  %v412_v53 = vld [vmem:[%s721_s10] ss:$0 sm:$0xff] }
  0x40   :  { %250 = vmatpush.msra.mxu2 %v215_v50  ;;  %359 = vmatpush.msrb.mxu1 %v352_v30 }
  0x41   :  { %285 = vmatpush.msra.mxu3 %v262_v60  ;;  %319 = vmatpush.msrb.mxu0 %v310_v11 }
  0x42   :  { %360 = vmatpush.msrb.mxu1 %v351_v31 }
  0x43   :  { %286 = vmatpush.msra.mxu3 %v261_v61  ;;  %320 = vmatpush.msrb.mxu0 %v309_v12 }
  0x44   :  { %361 = vmatpush.msrb.mxu1 %v350_v32 }
  0x45   :  { %287 = vmatpush.msra.mxu3 %v260_v62  ;;  %321 = vmatpush.msrb.mxu0 %v308_v13 }
  0x46   :  { %362 = vmatpush.msrb.mxu1 %v349_v33 }
  0x47   :  { %288 = vmatpush.msra.mxu3 %v259_v0  ;;  %322 = vmatpush.msrb.mxu0 %v307_v14 }
  0x48   :  { %363 = vmatpush.msrb.mxu1 %v348_v34 }
  0x49   :  { %289 = vmatpush.msra.mxu3 %v258_v6  ;;  %323 = vmatpush.msrb.mxu0 %v306_v15 }
  0x4a   :  { %364 = vmatpush.msrb.mxu1 %v347_v35 }
  0x4b   :  { %290 = vmatpush.msra.mxu3 %v257_v7  ;;  %324 = vmatpush.msrb.mxu0 %v305_v16 }
  0x4c   :  { %365 = vmatpush.msrb.mxu1 %v346_v36 }
  0x4d   :  { %291 = vmatpush.msra.mxu3 %v256_v8  ;;  %325 = vmatpush.msrb.mxu0 %v304_v17 }
  0x4e   :  { %366 = vmatpush.msrb.mxu1 %v345_v37 }
  0x4f   :  { %326 = vmatpush.msrb.mxu0 %v303_v18 }
  0x50   :  { %367 = vmatpush.msrb.mxu1 %v344_v38 }
  0x51   :  { %327 = vmatpush.msrb.mxu0 %v302_v19 }
  0x52   :  { %368 = vmatpush.msrb.mxu1 %v343_v39 }
  0x53   :  { %328 = vmatpush.msrb.mxu0 %v301_v20 }
  0x54   :  { %369 = vmatpush.msrb.mxu1 %v342_v40 }
  0x55   :  { %329 = vmatpush.msrb.mxu0 %v300_v21 }
  0x56   :  { %370 = vmatpush.msrb.mxu1 %v341_v41 }
  0x57   :  { %330 = vmatpush.msrb.mxu0 %v299_v26 }
  0x58   :  { %371 = vmatpush.msrb.mxu1 %v340_v46 }
  0x59   :  { %331 = vmatpush.msrb.mxu0 %v298_v27 }
  0x5a   :  { %372 = vmatpush.msrb.mxu1 %v339_v47 }
  0x5b   :  { %332 = vmatpush.msrb.mxu0 %v297_v28 }
  0x5c   :  { %373 = vmatpush.msrb.mxu1 %v338_v48 }
  0xb8   :  { %v191_v1 = vpop.f32.mrf.mxu0 }
  0xb9   :  { %v211_v2 = vpop.f32.mrf.mxu1  ;;  %v192_v3 = vadd.f32 %v408_v63, %v191_v1 }
  0xbb   :  { %v212_v4 = vadd.f32 %v211_v2, %v192_v3 }
  0xbd   :  { %v214_v5 = vmax.f32 %v212_v4, 0.0 }
  0xbf   :  { %251 = vmatmul.f32.vlgmr.msra.gmra.mxu2 %v214_v5 }
 0x142   :  { %v252_v23 = vpop.f32.mrf.mxu2 }
 0x143   :  { %v253_v24 = vadd.f32 %v409_v22, %v252_v23 }
 0x145   :  { %v255_v25 = vmax.f32 %v253_v24, 0.0 }
 0x147   :  { %292 = vmatmul.f32.vlgmr.msra.gmra.mxu3 %v255_v25 }
 0x1ca   :  { %v293_v43 = vpop.f32.mrf.mxu3 }
 0x1cb   :  { %v294_v44 = vadd.f32 %v410_v42, %v293_v43 }
 0x1cd   :  { %v296_v45 = vmax.f32 %v294_v44, 0.0 }
 0x1cf   :  { %333 = vmatmul.f32.vlgmr.msrb.gmra.mxu0 %v296_v45 }
 0x24c   :  { %v334_v50 = vpop.f32.mrf.mxu0 }
 0x24d   :  { %v335_v51 = vadd.f32 %v411_v49, %v334_v50 }
 0x24f   :  { %v337_v52 = vmax.f32 %v335_v51, 0.0 }
 0x251   :  { %374 = vmatmul.f32.vlgmr.msrb.gmra.mxu1 %v337_v52 }
 0x2ce   :  { %v375_v54 = vpop.f32.mrf.mxu1 }
 0x2cf   :  { %v376_v55 = vadd.f32 %v412_v53, %v375_v54 }
 0x2d1   :  { %378 = vst [vmem:[#allocation13] sm:$0x3] %v376_v55 }
 0x2d2   :  { %389 = dma.vmem_to_hbm [thread:$0]  %s385_s5, 32, %s387_s14, [#allocation4]  }
 0x2d3   :  { %589 = dma.done.wait [#allocation4], 32  }
 0x2d4   :  { %590 = vsyncadd [#allocation4], 4294967264 }
 0x2d5   :  { %394 = vsyncpa [#allocation3], 1 }
 0x2d6   :  { %395 = vsyncpa [#allocation6], 1 }
 0x2d7   :  { %396 = vsyncpa [#allocation9], 1 }
 0x2d8   :  { %397 = vsyncpa [#allocation12], 1 }
 0x2d9   :  { %398 = vsyncpa [#allocation4], 1 }

</bundles_post_ra>
